<compile_context>
chip_gen: v7x
topology: tpu7x:2x2x1
jax: 0.10.0
libtpu: 0.0.40
codegen_flags: <defaults>
</compile_context>

<pallas_src>
import functools

import jax
import jax.numpy as jnp
from jax.experimental import pallas as pl
from jax.experimental.pallas import tpu as pltpu


def _dense_kernel(x_ref, w_ref, b_ref, y_ref, *scratch,
                  d_in, d_out, tm, tk, tn, nk, nj, w_resident, acc_in_out):
    """One (row-block i, d_out-block j, K-block k) grid step.

    x_ref: (tm, tk)            input tile (matmul LHS; also copied to output)
    w_ref: (d_in, d_out) if resident else (tk, tn)
    b_ref: (1, tn)             bias tile
    y_ref: (tm, d_in + d_out)  output block, resident across j and k
    scratch: optional (tm, tn) f32 accumulator (absent when acc_in_out)
    """
    j = pl.program_id(1)
    k = pl.program_id(2)

    x_blk = x_ref[...]

    if w_resident and nk > 1:
        # Whole W is resident in VMEM; take the k-th row slice for the MXU.
        w_blk = w_ref[pl.ds(pl.multiple_of(k * tk, tk), tk), :]
    else:
        w_blk = w_ref[...]

    contrib = jnp.dot(x_blk, w_blk, preferred_element_type=jnp.float32)

    # Fused torch.cat: stream this K-slice of x straight into the identity
    # columns of the resident output block (only once per row block: j == 0).
    @pl.when(j == 0)
    def _copy_identity():
        off = 0 if nk == 1 else pl.multiple_of(k * tk, tk)
        y_ref[:, pl.ds(off, tk)] = x_blk.astype(y_ref.dtype)

    # Column offset of this d_out tile inside the output block.
    col = d_in if nj == 1 else d_in + j * tn

    if acc_in_out:
        # float32 output: accumulate directly into the resident output block
        # (saves the (tm, tn) scratch and the final copy pass).
        @pl.when(k == 0)
        def _init():
            y_ref[:, pl.ds(col, tn)] = jnp.broadcast_to(
                b_ref[...].astype(y_ref.dtype), (tm, tn))

        y_ref[:, pl.ds(col, tn)] += contrib.astype(y_ref.dtype)
    else:
        acc_ref = scratch[0]

        @pl.when(k == 0)
        def _init():
            acc_ref[...] = jnp.zeros_like(acc_ref)

        acc_ref[...] += contrib

        @pl.when(k == nk - 1)
        def _finish():
            out = acc_ref[...] + b_ref[...].astype(jnp.float32)
            y_ref[:, pl.ds(col, tn)] = out.astype(y_ref.dtype)


def _largest_divisor(dim: int, candidates) -> int:
    for c in candidates:
        if c <= dim and dim % c == 0:
            return c
    return dim


def _round_up(x: int, m: int) -> int:
    return ((x + m - 1) // m) * m


def _vmem_capacity_bytes() -> int:
    try:
        info = pltpu.get_tpu_info()
        cap = getattr(info, "vmem_capacity_bytes", None)
        if cap:
            return int(cap)
    except Exception:
        pass
    return 64 * 1024 * 1024  # conservative: v7x per-TensorCore VMEM


def dense_layer_forward(x: jax.Array, w: jax.Array, b: jax.Array) -> jax.Array:
    """Equivalent of DenseLayer(Linear).forward: cat((x, x @ w + b), dim=1).

    x: (n_smps, d_in); w: (d_in, d_out) (already transposed vs torch.nn.Linear);
    b: (d_out,).  Returns (n_smps, d_in + d_out) in x.dtype.
    """
    n, d_in = x.shape
    d_in_w, d_out = w.shape
    assert d_in == d_in_w, (d_in, d_in_w)
    assert b.shape == (d_out,), b.shape

    itemsize = jnp.dtype(x.dtype).itemsize
    acc_in_out = jnp.dtype(x.dtype) == jnp.dtype(jnp.float32)

    cap = _vmem_capacity_bytes()
    budget = int(cap * 0.70)       # tile-selection working budget
    vmem_limit = int(cap * 0.85)   # headroom handed to Mosaic

    # --- K (reduction / identity-copy) tile over d_in ----------------------
    tk = _largest_divisor(d_in, (512, 256, 128))

    # --- Weight residency / d_out tiling -----------------------------------
    w_resident_bytes = 2 * d_in * d_out * itemsize  # conservative: 2 buffers
    w_resident = w_resident_bytes <= budget // 2
    tn = d_out if w_resident else _largest_divisor(d_out, (1024, 512, 256, 128))

    def vmem_bytes(tm_):
        x_b = 2 * tm_ * tk * itemsize
        y_b = 2 * tm_ * (d_in + d_out) * itemsize
        w_b = w_resident_bytes if w_resident else 2 * tk * tn * itemsize
        b_b = 2 * tn * itemsize
        acc_b = 0 if acc_in_out else tm_ * tn * 4
        return x_b + y_b + w_b + b_b + acc_b

    # --- M (row) tile: dtype-aware minimum, 256-aligned candidates ---------
    sub = max(8, 32 // itemsize)                 # 8 (f32), 16 (bf16), 32 (i8)
    tm_cap = min(1024, _round_up(n, sub))
    if n > sub:
        # Keep >=2 row blocks so the "parallel" axis spans both v7x cores.
        tm_cap = min(tm_cap, _round_up(-(-n // 2), sub))
    tm = None
    for cand in (1024, 512, 256, 128, 64, 32, 16, 8):
        if cand <= tm_cap and vmem_bytes(cand) <= budget:
            tm = cand
            break
    if tm is None:
        tm = sub
        if w_resident and vmem_bytes(tm) > budget:
            # Too big for residency after all: stream d_out tiles of W.
            w_resident = False
            tn = _largest_divisor(d_out, (1024, 512, 256, 128))

    ni = -(-n // tm)          # cdiv: handles non-divisible n (tail rows masked)
    nj = d_out // tn
    nk = d_in // tk
    grid = (ni, nj, nk)

    b2 = b.reshape(1, d_out)

    x_spec = pl.BlockSpec((tm, tk), lambda i, j, k: (i, k))
    if w_resident:
        # Constant block index: W is DMA'd from HBM exactly once.
        w_spec = pl.BlockSpec((d_in, d_out), lambda i, j, k: (0, 0))
    else:
        w_spec = pl.BlockSpec((tk, tn), lambda i, j, k: (k, j))
    b_spec = pl.BlockSpec((1, tn), lambda i, j, k: (0, j))
    y_spec = pl.BlockSpec((tm, d_in + d_out), lambda i, j, k: (i, 0))

    scratch_shapes = [] if acc_in_out else [pltpu.VMEM((tm, tn), jnp.float32)]

    kernel = functools.partial(
        _dense_kernel, d_in=d_in, d_out=d_out, tm=tm, tk=tk, tn=tn,
        nk=nk, nj=nj, w_resident=w_resident, acc_in_out=acc_in_out)

    # Actual HBM traffic: x re-streamed per d_out block, W re-streamed per row
    # block unless resident, output written once.
    x_bytes = nj * n * d_in * itemsize
    w_bytes = (1 if w_resident else ni) * d_in * d_out * itemsize
    y_bytes = n * (d_in + d_out) * itemsize
    cost = pl.CostEstimate(
        flops=2 * n * d_in * d_out,
        transcendentals=0,
        bytes_accessed=x_bytes + w_bytes + y_bytes + d_out * itemsize,
    )

    return pl.pallas_call(
        kernel,
        out_shape=jax.ShapeDtypeStruct((n, d_in + d_out), x.dtype),
        grid_spec=pltpu.PrefetchScalarGridSpec(
            num_scalar_prefetch=0,
            grid=grid,
            in_specs=[x_spec, w_spec, b_spec],
            out_specs=y_spec,
            scratch_shapes=scratch_shapes,
        ),
        compiler_params=pltpu.CompilerParams(
            dimension_semantics=("parallel", "arbitrary", "arbitrary"),
            vmem_limit_bytes=vmem_limit,
        ),
        cost_estimate=cost,
    )(x, w, b2)


if __name__ == "__main__":
    key = jax.random.PRNGKey(0)
    k1, k2, k3 = jax.random.split(key, 3)

    # Small shapes: n_smps=8, d_in=32, inner-module output d_out=32.
    n, d_in, d_out = 8, 32, 32
    x = jax.random.normal(k1, (n, d_in), dtype=jnp.float32)
    w = jax.random.normal(k2, (d_in, d_out), dtype=jnp.float32) / jnp.sqrt(d_in)
    b = jax.random.normal(k3, (d_out,), dtype=jnp.float32)

    y = dense_layer_forward(x, w, b)
    y = jax.block_until_ready(y)

    # Reference: torch.cat((x, Linear(x)), dim=1) in plain JAX.
    y_ref = jnp.concatenate([x, x @ w + b], axis=1)
    assert y.shape == y_ref.shape, (y.shape, y_ref.shape)
    assert jnp.allclose(y, y_ref, atol=1e-5, rtol=1e-5)

    print("KERNEL_OK")
</pallas_src>

<mosaic_0001>
module attributes {stable_mosaic.version = 11 : i64} {
  func.func @_dense_kernel(%arg0: i32, %arg1: i32, %arg2: i32, %arg3: memref<8x32xf32, #tpu.memory_space<vmem>>, %arg4: memref<32x32xf32, #tpu.memory_space<vmem>>, %arg5: memref<1x32xf32, #tpu.memory_space<vmem>>, %arg6: memref<8x64xf32, #tpu.memory_space<vmem>>) attributes {dimension_semantics = [#tpu.dimension_semantics<parallel>, #tpu.dimension_semantics<arbitrary>, #tpu.dimension_semantics<arbitrary>], iteration_bounds = array<i64: 1, 1, 1>, scalar_prefetch = 0 : i64, scratch_operands = 0 : i64, tpu.core_type = #tpu.core_type<tc>, window_params = [{transform_indices = @transform_0, window_bounds = array<i64: 8, 32>}, {pipeline_mode = #tpu.pipeline_mode<synchronous>, transform_indices = @transform_1, window_bounds = array<i64: 32, 32>}, {transform_indices = @transform_2, window_bounds = array<i64: 1, 32>}, {transform_indices = @transform_3, window_bounds = array<i64: 8, 64>}]} {
    %c0 = arith.constant 0 : index
    %c0_0 = arith.constant 0 : index
    %0 = vector.load %arg3[%c0, %c0_0] : memref<8x32xf32, #tpu.memory_space<vmem>>, vector<8x32xf32>
    %c0_1 = arith.constant 0 : index
    %c0_2 = arith.constant 0 : index
    %1 = vector.load %arg4[%c0_1, %c0_2] : memref<32x32xf32, #tpu.memory_space<vmem>>, vector<32x32xf32>
    %cst = arith.constant dense<0.000000e+00> : vector<8x32xf32>
    %2 = tpu.matmul %0, %1, %cst {dimension_numbers = #tpu.dot_dimension_numbers<[1], [0], [0], [1], [0, 0, 1, 1], [], []>} : vector<8x32xf32>, vector<32x32xf32>, vector<8x32xf32> -> vector<8x32xf32>
    %c0_i32 = arith.constant 0 : i32
    %3 = arith.cmpi eq, %arg1, %c0_i32 : i32
    %4 = arith.extui %3 : i1 to i32
    %c0_i32_3 = arith.constant 0 : i32
    %5 = arith.cmpi ne, %4, %c0_i32_3 : i32
    scf.if %5 {
      %c0_9 = arith.constant 0 : index
      %c0_10 = arith.constant 0 : index
      %12 = vector.load %arg6[%c0_9, %c0_10] : memref<8x64xf32, #tpu.memory_space<vmem>>, vector<8x32xf32>
      tpu.vector_store %arg6[%c0_9, %c0_10], %0 {strides = array<i32>} : memref<8x64xf32, #tpu.memory_space<vmem>>, vector<8x32xf32>,
    } else {
    }
    %c0_i32_4 = arith.constant 0 : i32
    %6 = arith.cmpi eq, %arg2, %c0_i32_4 : i32
    %7 = arith.extui %6 : i1 to i32
    %c0_i32_5 = arith.constant 0 : i32
    %8 = arith.cmpi ne, %7, %c0_i32_5 : i32
    scf.if %8 {
      %c0_9 = arith.constant 0 : index
      %c0_10 = arith.constant 0 : index
      %12 = vector.load %arg5[%c0_9, %c0_10] : memref<1x32xf32, #tpu.memory_space<vmem>>, vector<1x32xf32>
      %13 = vector.shape_cast %12 : vector<1x32xf32> to vector<1x32xf32>
      %14 = vector.broadcast %13 : vector<1x32xf32> to vector<8x32xf32>
      %c0_11 = arith.constant 0 : index
      %c32_12 = arith.constant 32 : index
      %15 = vector.load %arg6[%c0_11, %c32_12] : memref<8x64xf32, #tpu.memory_space<vmem>>, vector<8x32xf32>
      tpu.vector_store %arg6[%c0_11, %c32_12], %14 {strides = array<i32>} : memref<8x64xf32, #tpu.memory_space<vmem>>, vector<8x32xf32>,
    } else {
    }
    %c0_6 = arith.constant 0 : index
    %c32 = arith.constant 32 : index
    %9 = vector.load %arg6[%c0_6, %c32] : memref<8x64xf32, #tpu.memory_space<vmem>>, vector<8x32xf32>
    %10 = arith.addf %9, %2 : vector<8x32xf32>
    %c0_7 = arith.constant 0 : index
    %c32_8 = arith.constant 32 : index
    %11 = vector.load %arg6[%c0_7, %c32_8] : memref<8x64xf32, #tpu.memory_space<vmem>>, vector<8x32xf32>
    tpu.vector_store %arg6[%c0_7, %c32_8], %10 {strides = array<i32>} : memref<8x64xf32, #tpu.memory_space<vmem>>, vector<8x32xf32>,
    return
  }
  func.func @transform_0(%arg0: i32, %arg1: i32, %arg2: i32) -> (i32, i32) {
    %c0_i32 = arith.constant 0 : i32
    return %arg0, %arg2 : i32, i32
  }
  func.func @transform_1(%arg0: i32, %arg1: i32, %arg2: i32) -> (i32, i32) {
    %c0_i32 = arith.constant 0 : i32
    %c0_i32_0 = arith.constant 0 : i32
    %c0_i32_1 = arith.constant 0 : i32
    return %c0_i32, %c0_i32_0 : i32, i32
  }
  func.func @transform_2(%arg0: i32, %arg1: i32, %arg2: i32) -> (i32, i32) {
    %c0_i32 = arith.constant 0 : i32
    %c0_i32_0 = arith.constant 0 : i32
    return %c0_i32, %arg1 : i32, i32
  }
  func.func @transform_3(%arg0: i32, %arg1: i32, %arg2: i32) -> (i32, i32) {
    %c0_i32 = arith.constant 0 : i32
    %c0_i32_0 = arith.constant 0 : i32
    return %arg0, %c0_i32 : i32, i32
  }
}

</mosaic_0001>

<bundles_post_ra>
// kernel: tpu_custom_call.1
= control target key start
LH: loop header
LB: loop body
LE: loop exit
PB: predicated region body
PF: predicated region fallthrough
CT: control target
= control target key end

     0   :  { %8 = vsyncpa [#allocation3], 0  ;;  %s344_s0 = inlined_call_operand.hbm [shape: f32[8,32], index: 0, kind: input, shape index: {}]   ;;  %s345_s1 = inlined_call_operand.hbm [shape: f32[32,32], index: 1, kind: input, shape index: {}]   ;;  %s346_s2 = inlined_call_operand.vmem [shape: f32[1,32], index: 2, kind: input, shape index: {}]   ;;  %s347_s3 = inlined_call_operand.hbm [shape: f32[8,64], index: 3, kind: output, shape index: {}]  }
   0x1   :  { %9 = vsyncpa [#allocation6], 0 }
   0x2   :  { %10 = vsyncpa [#allocation4], 0  ;;  %s269_s12 = smov [#allocation2]   ;;  %s270_s14 = smov [#allocation5]  }
   0x3   :  { %s17_s13 = sshll.u32 %s269_s12, 4  ;;  %s26_s15 = sshll.u32 %s270_s14, 4  ;;  %s18_s13 = int_to_ptr.vmem [resolvable:$true] %s17_s13  ;;  %s298_s15 = int_to_ptr.vmem [resolvable:$true] %s26_s15 }
   0x4   :  { %s197_s18 = scalar_lea.hbm %s344_s0, 128 }
   0x5   :  { %p198_p0 = scmp.ne.s32.totalorder %s344_s0, %s197_s18  ;;  %p201_p1 = scmp.lt.u32.totalorder %s197_s18, %s344_s0 }
   0x7   :  { %p203_p2 = pnand %p201_p1, %p198_p0 }
   0x9   :  { %206 = shalt.err (!%p203_p2)
}
   0xa   :  { %s207_s23 = scalar_lea.vmem %s18_s13, 128  ;;  %p212_p4 = scmp.lt.s32.totalorder %s18_s13, %s18_s13 }
   0xb   :  { %p208_p3 = scmp.ne.s32.totalorder %s18_s13, %s207_s23  ;;  %p213_p5 = scmp.lt.s32.totalorder %s207_s23, %s207_s23 }
   0xd   :  { %p214_p6 = por %p213_p5, %p212_p4 }
   0xf   :  { %p215_p7 = pnand %p214_p6, %p208_p3 }
  0x11   :  { %218 = shalt.err (!%p215_p7)
}
  0x12   :  { %20 = dma.hbm_to_vmem [thread:$0]  %s344_s0, 128, %s18_s13, [#allocation3]  }
  0x13   :  { %s219_s28 = scalar_lea.hbm %s345_s1, 512 }
  0x14   :  { %p220_p8 = scmp.ne.s32.totalorder %s345_s1, %s219_s28  ;;  %p223_p9 = scmp.lt.u32.totalorder %s219_s28, %s345_s1 }
  0x16   :  { %p225_p10 = pnand %p223_p9, %p220_p8 }
  0x18   :  { %228 = shalt.err (!%p225_p10)
}
  0x19   :  { %s229_s6 = scalar_lea.vmem %s298_s15, 512  ;;  %p234_p12 = scmp.lt.s32.totalorder %s298_s15, %s298_s15 }
  0x1a   :  { %p230_p11 = scmp.ne.s32.totalorder %s298_s15, %s229_s6  ;;  %p235_p13 = scmp.lt.s32.totalorder %s229_s6, %s229_s6 }
  0x1c   :  { %p236_p0 = por %p235_p13, %p234_p12 }
  0x1e   :  { %p237_p1 = pnand %p236_p0, %p230_p11 }
  0x20   :  { %240 = shalt.err (!%p237_p1)
}
  0x21   :  { %s271_s0 = smov 128   ;;  %s272_s7 = smov 8  }
  0x22   :  { %32 = dma.hbm_to_vmem [thread:$0]  %s345_s1, 512, %s298_s15, [#allocation6], %s271_s0, %s271_s0, %s272_s7  }
  0x23   :  { %263 = dma.done.wait [#allocation3], 128  }
  0x24   :  { %264 = vsyncadd [#allocation3], 4294967168 }
  0x25   :  { %265 = dma.done.wait [#allocation6], 512  }
  0x26   :  { %266 = vsyncadd [#allocation6], 4294966784  ;;  %v273_v0 = vmov 0.0|0.0   ;;  %vm274_vm0 = vmmov 0   ;;  %v275_v1 = vmov 0.0   ;;  %v42_v2 = vld [vmem:[#allocation5] sm:$0xff] }
  0x27   :  { %182 = vmatprep.subr.bf16.mxu0 %v273_v0  ;;  %179 = vmatprep.mubr.msk.f32.mxu0 %vm274_vm0, %v275_v1  ;;  %v43_v3 = vld [vmem:[#allocation5 + $0x8] sm:$0xff]  ;;  %v44_v4 = vld [vmem:[#allocation5 + $0x10] sm:$0xff]  ;;  %v45_v6 = vld [vmem:[#allocation5 + $0x18] sm:$0xff]  ;;  %vm46_vm1 = vcmask 261120   ;;  %s276_s1 = smov 32   ;;  %vm138_vm2 = vcmask 523520  }
  0x28   :  { %v183_v5 = vpack.c.bf16 %v43_v3, %v42_v2  ;;  %v41_v7 = vld [vmem:[#allocation2] sm:$0xff]  ;;  %v186_v9 = vpack.c.bf16 %v45_v6, %v44_v4  ;;  %s277_s12 = smov [#allocation7]  }
  0x29   :  { %v165_v8 = vld [vmem:[%s346_s2] ss:$0 sm:$0xff]  ;;  %124 = vst.msk [vmem:[#allocation7] sm:$0xff] %vm46_vm1, %v41_v7  ;;  %s154_s13 = sshll.u32 %s277_s12, 4  ;;  %s155_s13 = int_to_ptr.vmem [resolvable:$true] %s154_s13 }
  0x2a   :  { %135 = vrot.lane.b32.xlu0 %v165_v8, %s276_s1  ;;  %184 = vmatpush3.bf16.msra.mxu0 %v183_v5  ;;  %s241_s2 = scalar_lea.vmem %s155_s13, 128  ;;  %p246_p3 = scmp.lt.s32.totalorder %s155_s13, %s155_s13 }
  0x2b   :  { %185 = vmatprep.subr.bf16.mxu0 %v273_v0  ;;  %p242_p2 = scmp.ne.s32.totalorder %s155_s13, %s241_s2  ;;  %p247_p4 = scmp.lt.s32.totalorder %s241_s2, %s241_s2 }
  0x2d   :  { %p248_p5 = por %p247_p4, %p246_p3 }
  0x2e   :  { %187 = vmatpush3.bf16.msra.mxu0 %v186_v9 }
  0x2f   :  { %p249_p6 = pnand %p248_p5, %p242_p2 }
  0x31   :  { %180 = vmatmul.mubr.msk.f32.vlgmr.msra.gmra.mrb[0].mxu0 %vm46_vm1, %v41_v7 }
  0x9c   :  { %v136_v10 = vpop.permute.xlu0 %135 }
  0x9d   :  { %139 = vst.msk [vmem:[#allocation7] sm:$0xff] %vm138_vm2, %v136_v10 }
  0xa4   :  { %v140_v13 = vld [vmem:[#allocation7] sm:$0xff] }
 0x104   :  { %v116_v11 = vpop.f32.mrb[0].mxu0 }
 0x105   :  { %142 = vrot.lane.b32.xlu0 %v116_v11, %s276_s1  ;;  %v181_v12 = vpop.f32.mrb[1].mxu0 }
 0x177   :  { %v143_v14 = vpop.permute.xlu0 %142 }
 0x178   :  { %v145_v15 = vadd.f32 %v143_v14, %v140_v13 }
 0x17a   :  { %147 = vst.msk [vmem:[#allocation7] sm:$0xff] %vm138_vm2, %v145_v15 }
 0x17b   :  { %252 = shalt.err (!%p249_p6)
}
 0x17c   :  { %s253_s16 = scalar_lea.hbm %s347_s3, 128 }
 0x17d   :  { %p254_p7 = scmp.ne.s32.totalorder %s347_s3, %s253_s16  ;;  %p257_p8 = scmp.lt.u32.totalorder %s253_s16, %s347_s3 }
 0x17f   :  { %p259_p9 = pnand %p257_p8, %p254_p7 }
 0x181   :  { %262 = shalt.err (!%p259_p9)
}
 0x182   :  { %157 = dma.vmem_to_hbm [thread:$0]  %s155_s13, 128, %s347_s3, [#allocation4]  }
 0x183   :  { %267 = dma.done.wait [#allocation4], 128  }
 0x184   :  { %268 = vsyncadd [#allocation4], 4294967168 }
 0x185   :  { %161 = vsyncpa [#allocation3], 1 }
 0x186   :  { %162 = vsyncpa [#allocation6], 1 }
 0x187   :  { %163 = vsyncpa [#allocation4], 1 }

</bundles_post_ra>
